<compile_context>
chip_gen: v5e
topology: v5e:2x2
jax: 0.10.0
libtpu: 0.0.40
codegen_flags: <defaults>
</compile_context>

<pallas_src>
from functools import partial

import jax
import jax.numpy as jnp
from jax.experimental import pallas as pl
from jax.experimental.pallas import tpu as pltpu


def _round_up(x, m):
    return ((x + m - 1) // m) * m


def _pick_tile(dim, target, granule):
    """Largest multiple of `granule` <= min(target, dim) that divides `dim`.

    `dim` must itself be a multiple of `granule`.
    """
    t = max(granule, (min(target, dim) // granule) * granule)
    while dim % t:
        t -= granule
    return t


def _patch_embed_kernel_single_k(p_ref, w_ref, b_ref, o_ref):
    # Whole reduction in one tile: dot + bias, store directly (no scratch).
    acc = jnp.dot(p_ref[...], w_ref[...], preferred_element_type=jnp.float32)
    o_ref[...] = (acc + b_ref[...].astype(jnp.float32)).astype(o_ref.dtype)


def _patch_embed_kernel_multi_k(p_ref, w_ref, b_ref, o_ref, acc_ref):
    # grid = (E tiles, M tiles, K tiles); K (reduction) innermost.
    k = pl.program_id(2)

    @pl.when(k == 0)
    def _init():
        acc_ref[...] = jnp.zeros_like(acc_ref)

    acc_ref[...] += jnp.dot(
        p_ref[...], w_ref[...], preferred_element_type=jnp.float32)

    @pl.when(k == pl.num_programs(2) - 1)
    def _finalize():
        o_ref[...] = (acc_ref[...] + b_ref[...].astype(jnp.float32)
                      ).astype(o_ref.dtype)


@partial(jax.jit,
         static_argnames=("patch_size", "flatten", "use_bf16", "tm", "tn", "tk"))
def _patch_embed_tokens(x, conv_w, conv_b, *, patch_size, flatten,
                        use_bf16, tm, tn, tk):
    B, C, H, W = x.shape
    ph, pw = patch_size
    gh, gw = H // ph, W // pw
    E = conv_w.shape[0]
    K = C * ph * pw
    M = B * gh * gw

    out_dtype = x.dtype
    compute_dtype = jnp.bfloat16 if use_bf16 else x.dtype

    # Layout-only glue (no FLOPs): extract non-overlapping patches,
    # channel-major inside K to match Conv2d's (C, ph, pw) reduction order.
    patches = (x.reshape(B, C, gh, ph, gw, pw)
                 .transpose(0, 2, 4, 1, 3, 5)
                 .reshape(M, K)).astype(compute_dtype)
    w_mat = conv_w.reshape(E, K).T.astype(compute_dtype)   # (K, E)
    b_row = conv_b.reshape(1, E).astype(jnp.float32)

    # Pad to TPU-friendly shapes: sublane granule 8 on M, lane granule 128 on
    # K/E (lane-dense unmasked output stores, filled MXU N dim). Zero padding
    # is exact for a matmul.
    Mp, Kp, Ep = _round_up(M, 8), _round_up(K, 128), _round_up(E, 128)
    tm = _pick_tile(Mp, tm, 8)
    tk = _pick_tile(Kp, tk, 128)
    tn = _pick_tile(Ep, tn, 128)

    def _pad2(a, rows, cols):
        r, c = a.shape
        if r == rows and c == cols:
            return a
        return jnp.pad(a, ((0, rows - r), (0, cols - c)))

    patches_p = _pad2(patches, Mp, Kp)
    w_p = _pad2(w_mat, Kp, Ep)
    b_p = _pad2(b_row, 1, Ep)

    itemsize = jnp.dtype(compute_dtype).itemsize
    cost = pl.CostEstimate(
        flops=2 * M * K * E,
        transcendentals=0,
        bytes_accessed=(Mp * Kp + Kp * Ep) * itemsize
        + Ep * 4 + Mp * Ep * jnp.dtype(out_dtype).itemsize,
    )

    if Kp == tk:
        # Fast path: single K tile -> no accumulator scratch, 2-D parallel
        # grid (j outermost so the (K, tn) weight tile stays resident in VMEM
        # across all M steps of a given E tile).
        grid = (Ep // tn, Mp // tm)
        out_p = pl.pallas_call(
            _patch_embed_kernel_single_k,
            out_shape=jax.ShapeDtypeStruct((Mp, Ep), out_dtype),
            grid_spec=pltpu.PrefetchScalarGridSpec(
                num_scalar_prefetch=0,
                grid=grid,
                in_specs=[
                    pl.BlockSpec((tm, Kp), lambda j, i: (i, 0)),   # patches
                    pl.BlockSpec((Kp, tn), lambda j, i: (0, j)),   # weight
                    pl.BlockSpec((1, tn), lambda j, i: (0, j)),    # bias
                ],
                out_specs=pl.BlockSpec((tm, tn), lambda j, i: (i, j)),
            ),
            compiler_params=pltpu.CompilerParams(
                dimension_semantics=("parallel", "parallel")),
            cost_estimate=cost,
        )(patches_p, w_p, b_p)
    else:
        # General path: K tiled (reduction innermost) with f32 accumulator.
        grid = (Ep // tn, Mp // tm, Kp // tk)
        out_p = pl.pallas_call(
            _patch_embed_kernel_multi_k,
            out_shape=jax.ShapeDtypeStruct((Mp, Ep), out_dtype),
            grid_spec=pltpu.PrefetchScalarGridSpec(
                num_scalar_prefetch=0,
                grid=grid,
                in_specs=[
                    pl.BlockSpec((tm, tk), lambda j, i, k: (i, k)),  # patches
                    pl.BlockSpec((tk, tn), lambda j, i, k: (k, j)),  # weight
                    pl.BlockSpec((1, tn), lambda j, i, k: (0, j)),   # bias
                ],
                out_specs=pl.BlockSpec((tm, tn), lambda j, i, k: (i, j)),
                scratch_shapes=[pltpu.VMEM((tm, tn), jnp.float32)],
            ),
            compiler_params=pltpu.CompilerParams(
                dimension_semantics=("parallel", "parallel", "arbitrary")),
            cost_estimate=cost,
        )(patches_p, w_p, b_p)

    out = out_p[:M, :E]
    if flatten:
        # == conv(x).flatten(2).transpose(1, 2)
        tokens = out.reshape(B, gh * gw, E)
    else:
        tokens = out.reshape(B, gh, gw, E).transpose(0, 3, 1, 2)
    # norm_layer=None -> nn.Identity()
    return tokens


def patch_embed_forward(x, conv_w, conv_b, patch_size, flatten=True, *,
                        use_bf16=True, tm=512, tn=512, tk=1024):
    """Pallas implementation of PatchEmbed.forward.

    Args:
      x:      (B, C, H, W) NCHW, like the PyTorch module input.
      conv_w: (E, C, ph, pw) Conv2d weight (PyTorch layout).
      conv_b: (E,) Conv2d bias.
      patch_size: (ph, pw).
    Returns:
      (tokens, H_out, W_out) with tokens shape (B, Gh*Gw, E) if flatten
      else (B, E, Gh, Gw).
    """
    B, C, H, W = x.shape
    ph, pw = patch_size
    gh, gw = H // ph, W // pw
    tokens = _patch_embed_tokens(
        x, conv_w, conv_b, patch_size=(ph, pw), flatten=flatten,
        use_bf16=use_bf16, tm=tm, tn=tn, tk=tk)
    return tokens, gh, gw


if __name__ == "__main__":
    # Small shapes consistent with the module: img_size=16, patch_size=4,
    # in_chans=4, embed_dim=32, batch=2.
    B, C, H, W = 2, 4, 16, 16
    ph = pw = 4
    E = 32

    key = jax.random.PRNGKey(0)
    kx, kw, kb = jax.random.split(key, 3)
    x = jax.random.normal(kx, (B, C, H, W), dtype=jnp.float32)
    conv_w = jax.random.normal(kw, (E, C, ph, pw), dtype=jnp.float32) * 0.02
    conv_b = jax.random.normal(kb, (E,), dtype=jnp.float32) * 0.02

    # Reference: XLA conv (same semantics as nn.Conv2d), f32.
    Hout, Wout = H // ph, W // pw
    ref = jax.lax.conv_general_dilated(
        x, conv_w, window_strides=(ph, pw), padding="VALID",
        dimension_numbers=("NCHW", "OIHW", "NCHW"),
    ) + conv_b.reshape(1, E, 1, 1)
    ref_tokens = ref.reshape(B, E, Hout * Wout).transpose(0, 2, 1)

    # 1) Default bf16-fed MXU path (single-K fast path).
    tokens, gh, gw = patch_embed_forward(x, conv_w, conv_b, (ph, pw),
                                         flatten=True, use_bf16=True)
    tokens = jax.block_until_ready(tokens)
    assert tokens.shape == (B, Hout * Wout, E)
    assert gh == Hout and gw == Wout
    assert jnp.allclose(tokens, ref_tokens, atol=1e-2, rtol=1e-2)

    # 2) Exact f32 path.
    tokens_f32, _, _ = patch_embed_forward(x, conv_w, conv_b, (ph, pw),
                                           flatten=True, use_bf16=False)
    tokens_f32 = jax.block_until_ready(tokens_f32)
    assert jnp.allclose(tokens_f32, ref_tokens, atol=1e-4, rtol=1e-4)

    # 3) Exercise the K-tiled accumulator path (C=16 -> K=256, tk=128).
    C2 = 16
    kx2, kw2 = jax.random.split(key, 2)
    x2 = jax.random.normal(kx2, (B, C2, H, W), dtype=jnp.float32)
    conv_w2 = jax.random.normal(kw2, (E, C2, ph, pw), dtype=jnp.float32) * 0.02
    ref2 = jax.lax.conv_general_dilated(
        x2, conv_w2, window_strides=(ph, pw), padding="VALID",
        dimension_numbers=("NCHW", "OIHW", "NCHW"),
    ) + conv_b.reshape(1, E, 1, 1)
    ref2_tokens = ref2.reshape(B, E, Hout * Wout).transpose(0, 2, 1)
    tokens2, _, _ = patch_embed_forward(x2, conv_w2, conv_b, (ph, pw),
                                        flatten=True, use_bf16=False, tk=128)
    tokens2 = jax.block_until_ready(tokens2)
    assert jnp.allclose(tokens2, ref2_tokens, atol=1e-4, rtol=1e-4)

    # 4) flatten=False branch (B, E, Gh, Gw).
    grid_out, _, _ = patch_embed_forward(x, conv_w, conv_b, (ph, pw),
                                         flatten=False, use_bf16=False)
    grid_out = jax.block_until_ready(grid_out)
    assert grid_out.shape == (B, E, Hout, Wout)
    assert jnp.allclose(grid_out, ref, atol=1e-4, rtol=1e-4)

    print("KERNEL_OK")
</pallas_src>

<mosaic_0001>
module attributes {stable_mosaic.version = 11 : i64} {
  func.func @_patch_embed_kernel_single_k(%arg0: i32, %arg1: i32, %arg2: memref<32x128xbf16, #tpu.memory_space<vmem>>, %arg3: memref<128x128xbf16, #tpu.memory_space<vmem>>, %arg4: memref<1x128xf32, #tpu.memory_space<vmem>>, %arg5: memref<32x128xf32, #tpu.memory_space<vmem>>) attributes {dimension_semantics = [#tpu.dimension_semantics<parallel>, #tpu.dimension_semantics<parallel>], iteration_bounds = array<i64: 1, 1>, scalar_prefetch = 0 : i64, scratch_operands = 0 : i64, tpu.core_type = #tpu.core_type<tc>, window_params = [{transform_indices = @transform_0, window_bounds = array<i64: 32, 128>}, {transform_indices = @transform_1, window_bounds = array<i64: 128, 128>}, {transform_indices = @transform_2, window_bounds = array<i64: 1, 128>}, {transform_indices = @transform_3, window_bounds = array<i64: 32, 128>}]} {
    %c0 = arith.constant 0 : index
    %c0_0 = arith.constant 0 : index
    %0 = vector.load %arg2[%c0, %c0_0] : memref<32x128xbf16, #tpu.memory_space<vmem>>, vector<32x128xbf16>
    %c0_1 = arith.constant 0 : index
    %c0_2 = arith.constant 0 : index
    %1 = vector.load %arg3[%c0_1, %c0_2] : memref<128x128xbf16, #tpu.memory_space<vmem>>, vector<128x128xbf16>
    %cst = arith.constant dense<0.000000e+00> : vector<32x128xf32>
    %2 = tpu.matmul %0, %1, %cst {dimension_numbers = #tpu.dot_dimension_numbers<[1], [0], [0], [1], [0, 0, 1, 1], [], []>} : vector<32x128xbf16>, vector<128x128xbf16>, vector<32x128xf32> -> vector<32x128xf32>
    %c0_3 = arith.constant 0 : index
    %c0_4 = arith.constant 0 : index
    %3 = vector.load %arg4[%c0_3, %c0_4] : memref<1x128xf32, #tpu.memory_space<vmem>>, vector<1x128xf32>
    %4 = vector.broadcast %3 : vector<1x128xf32> to vector<32x128xf32>
    %5 = arith.addf %2, %4 : vector<32x128xf32>
    %c0_5 = arith.constant 0 : index
    %c0_6 = arith.constant 0 : index
    %6 = vector.load %arg5[%c0_5, %c0_6] : memref<32x128xf32, #tpu.memory_space<vmem>>, vector<32x128xf32>
    tpu.vector_store %arg5[%c0_5, %c0_6], %5 {strides = array<i32>} : memref<32x128xf32, #tpu.memory_space<vmem>>, vector<32x128xf32>,
    return
  }
  func.func @transform_0(%arg0: i32, %arg1: i32) -> (i32, i32) {
    %c0_i32 = arith.constant 0 : i32
    %c0_i32_0 = arith.constant 0 : i32
    return %arg1, %c0_i32 : i32, i32
  }
  func.func @transform_1(%arg0: i32, %arg1: i32) -> (i32, i32) {
    %c0_i32 = arith.constant 0 : i32
    %c0_i32_0 = arith.constant 0 : i32
    return %c0_i32, %arg0 : i32, i32
  }
  func.func @transform_2(%arg0: i32, %arg1: i32) -> (i32, i32) {
    %c0_i32 = arith.constant 0 : i32
    %c0_i32_0 = arith.constant 0 : i32
    return %c0_i32, %arg0 : i32, i32
  }
  func.func @transform_3(%arg0: i32, %arg1: i32) -> (i32, i32) {
    %c0_i32 = arith.constant 0 : i32
    return %arg1, %arg0 : i32, i32
  }
}

</mosaic_0001>

<bundles_post_ra>
// kernel: _patch_embed_tokens.1
= control target key start
LH: loop header
LB: loop body
LE: loop exit
PB: predicated region body
PF: predicated region fallthrough
CT: control target
= control target key end

     0   :  { %s287_s0 = inlined_call_operand.vmem [shape: bf16[32,128], index: 0, kind: input, shape index: {}]   ;;  %s288_s1 = inlined_call_operand.vmem [shape: bf16[128,128], index: 1, kind: input, shape index: {}]   ;;  %s289_s2 = inlined_call_operand.vmem [shape: f32[1,128], index: 2, kind: input, shape index: {}]   ;;  %s290_s3 = inlined_call_operand.hbm [shape: f32[32,128], index: 3, kind: output, shape index: {}]  }
   0x1   :  { %v189_v0 = vld [vmem:[%s288_s1 + $0x38] sm:$0xff]  ;;  %v188_v1 = vld [vmem:[%s288_s1 + $0x30] sm:$0xff] }
   0x2   :  { %99 = vmatpush.bf16.msra.mxu0 %v189_v0  ;;  %190 = vmatpush.bf16.msra.mxu1 %v189_v0 }
   0x3   :  { %8 = vsyncpa [#allocation3], 0  ;;  %v187_v2 = vld [vmem:[%s288_s1 + $0x28] sm:$0xff]  ;;  %v186_v3 = vld [vmem:[%s288_s1 + $0x20] sm:$0xff]  ;;  %s230_s10 = smov 8  }
   0x4   :  { %v185_v4 = vld [vmem:[%s288_s1 + $0x18] sm:$0xff]  ;;  %v184_v5 = vld [vmem:[%s288_s1 + $0x10] sm:$0xff]  ;;  %v183_v6 = vld [vmem:[%s288_s1 + $0x8] sm:$0xff] }
   0x5   :  { %v182_v7 = vld [vmem:[%s288_s1] sm:$0xff]  ;;  %v181_v9 = vld [vmem:[%s287_s0 + $0x8] sm:$0xff]  ;;  %s228_s1 = smov [#allocation2]  }
   0x6   :  { %100 = vmatpush.bf16.msra.mxu0 %v188_v1  ;;  %191 = vmatpush.bf16.msra.mxu1 %v188_v1  ;;  %v180_v8 = vld [vmem:[%s287_s0] sm:$0xff]  ;;  %s126_s7 = sshll.u32 %s228_s1, 4  ;;  %s128_s0 = sshll.u32 %s290_s3, 4  ;;  %s127_s7 = int_to_ptr.vmem [resolvable:$true] %s126_s7  ;;  %s129_s0 = int_to_ptr.hbm [resolvable:$true] %s128_s0 }
   0x7   :  { %v201_v10 = vld [vmem:[%s289_s2] ss:$0 sm:$0xff]  ;;  %s229_s2 = smov 128  }
   0xa   :  { %101 = vmatpush.bf16.msra.mxu0 %v187_v2  ;;  %192 = vmatpush.bf16.msra.mxu1 %v187_v2 }
   0xe   :  { %102 = vmatpush.bf16.msra.mxu0 %v186_v3  ;;  %193 = vmatpush.bf16.msra.mxu1 %v186_v3 }
  0x12   :  { %103 = vmatpush.bf16.msra.mxu0 %v185_v4  ;;  %194 = vmatpush.bf16.msra.mxu1 %v185_v4 }
  0x16   :  { %104 = vmatpush.bf16.msra.mxu0 %v184_v5  ;;  %195 = vmatpush.bf16.msra.mxu1 %v184_v5 }
  0x1a   :  { %105 = vmatpush.bf16.msra.mxu0 %v183_v6  ;;  %196 = vmatpush.bf16.msra.mxu1 %v183_v6 }
  0x1e   :  { %106 = vmatpush.bf16.msra.mxu0 %v182_v7  ;;  %197 = vmatpush.bf16.msra.mxu1 %v182_v7 }
  0x21   :  { %107 = vmatmul.bf16.vlgmr.msra.gmra.mxu0 %v180_v8  ;;  %112 = vmatmul.bf16.vlgmr.msra.gmra.mxu1 %v181_v9 }
  0x9e   :  { %v108_v11 = vpop.f32.mrf.mxu0  ;;  %v113_v12 = vpop.f32.mrf.mxu1 }
  0x9f   :  { %v109_v13 = vadd.f32 %v201_v10, %v108_v11  ;;  %v114_v14 = vadd.f32 %v201_v10, %v113_v12 }
  0xa1   :  { %118 = vst [vmem:[#allocation2] sm:$0xff] %v109_v13 }
  0xa2   :  { %120 = vst [vmem:[#allocation2 + $0x10] sm:$0xff] %v114_v14 }
  0xa6   :  { %v110_v15 = vpop.f32.mrf.mxu0  ;;  %v115_v16 = vpop.f32.mrf.mxu1 }
  0xa7   :  { %v111_v17 = vadd.f32 %v201_v10, %v110_v15  ;;  %v116_v18 = vadd.f32 %v201_v10, %v115_v16 }
  0xa9   :  { %119 = vst [vmem:[#allocation2 + $0x8] sm:$0xff] %v111_v17 }
  0xaa   :  { %121 = vst [vmem:[#allocation2 + $0x18] sm:$0xff] %v116_v18 }
  0xab   :  { %134 = dma.vmem_to_hbm [thread:$0]  %s127_s7, 512, %s129_s0, [#allocation3], %s229_s2, %s229_s2, %s230_s10  }
  0xac   :  { %226 = dma.done.wait [#allocation3], 512  }
  0xad   :  { %227 = vsyncadd [#allocation3], 4294966784 }
  0xae   :  { %139 = vsyncpa [#allocation3], 1 }

</bundles_post_ra>
